<compile_context>
chip_gen: v6e
topology: v6e:2x2x1
jax: 0.10.0
libtpu: 0.0.40
codegen_flags: <defaults>
</compile_context>

<pallas_src>
import functools
import math

import jax
import jax.numpy as jnp
from jax import lax
from jax.experimental import pallas as pl
from jax.experimental.pallas import tpu as pltpu


def causal_mask(n):
    # Reference-only helper (i >= j), used by the pure-JAX reference.
    i = jnp.arange(n)[:, None]
    j = jnp.arange(n)[None, :]
    return (i >= j).astype(jnp.float32)


def mhsa_kernel(x_ref, wq_ref, bq_ref, wk_ref, bk_ref, wv_ref, bv_ref,
                wout_ref, bout_ref, out_ref, k_scratch, v_scratch,
                *, num_heads, d_state, tq):
    d_model = num_heads * d_state
    ncols = x_ref.shape[1]
    qi = pl.program_id(1)

    # ---- K/V projection for the whole sequence, once per batch element ----
    # (q-tile axis is "arbitrary" -> sequential per batch, scratch persists;
    #  the x block index does not change with qi, so it is DMA'd only once)
    @pl.when(qi == 0)
    def _():
        x_all = x_ref[0]                                        # (ncols, d_model)
        k = jnp.dot(x_all, wk_ref[...],
                    preferred_element_type=jnp.float32) + bk_ref[...]
        v = jnp.dot(x_all, wv_ref[...],
                    preferred_element_type=jnp.float32) + bv_ref[...]
        k_scratch[...] = k.astype(k_scratch.dtype)
        v_scratch[...] = v.astype(v_scratch.dtype)

    # ---- Q projection for this query tile (pre-scaled by 1/sqrt(d_state)) ----
    scale = 1.0 / math.sqrt(d_state)
    q_start = pl.multiple_of(qi * tq, tq)
    xq = x_ref[0, pl.ds(q_start, tq), :]                        # (tq, d_model)
    q = ((jnp.dot(xq, wq_ref[...], preferred_element_type=jnp.float32)
          + bq_ref[...]) * scale).astype(x_ref.dtype)           # MXU-native dtype

    # ---- causal mask for this tile, built in-kernel (hoisted out of head loop)
    row_ids = q_start + lax.broadcasted_iota(jnp.int32, (tq, ncols), 0)
    col_ids = lax.broadcasted_iota(jnp.int32, (tq, ncols), 1)
    causal = row_ids >= col_ids                                 # (tq, ncols) bool

    out_acc = jnp.zeros((tq, d_model), jnp.float32)

    for h in range(num_heads):                                  # static unroll
        lo = h * d_state
        qh = q[:, lo:lo + d_state]                              # (tq, d_state)
        kh = k_scratch[:, lo:lo + d_state]                      # (ncols, d_state)
        vh = v_scratch[:, lo:lo + d_state]

        # contract on d_state of both operands: MXU consumes K directly
        scores = lax.dot_general(
            qh, kh, (((1,), (1,)), ((), ())),
            preferred_element_type=jnp.float32)                 # (tq, ncols)
        scores = jnp.where(causal, scores, -1.0e10)             # matches reference fill

        scores = scores - jnp.max(scores, axis=-1, keepdims=True)
        p = jnp.exp(scores)
        p = p * pl.reciprocal(jnp.sum(p, axis=-1, keepdims=True), approx=True)

        head_out = jnp.dot(p.astype(vh.dtype), vh,
                           preferred_element_type=jnp.float32)  # (tq, d_state)

        # fold head straight into the output projection (no lane-axis concat)
        out_acc = out_acc + jnp.dot(head_out.astype(wout_ref.dtype),
                                    wout_ref[lo:lo + d_state, :],
                                    preferred_element_type=jnp.float32)

    out_ref[0] = (out_acc + bout_ref[...]).astype(out_ref.dtype)


def multi_head_self_attention(x, wqkv, bqkv, wout, bout, num_heads):
    bs, ncols, d_model = x.shape
    assert d_model % num_heads == 0
    d_state = d_model // num_heads

    # Query-tile size: prefer 128-row-aligned tiles, else whole sequence.
    tq = ncols
    for cand in (512, 256, 128):
        if ncols % cand == 0:
            tq = cand
            break
    n_q = ncols // tq

    # Split the fused qkv weight/bias in the wrapper (free; avoids unaligned
    # in-kernel lane slices of the big fused weight).
    wq = wqkv[:, 0 * d_model:1 * d_model]
    wk = wqkv[:, 1 * d_model:2 * d_model]
    wv = wqkv[:, 2 * d_model:3 * d_model]
    bq = bqkv[0 * d_model:1 * d_model].reshape(1, d_model)
    bk = bqkv[1 * d_model:2 * d_model].reshape(1, d_model)
    bv = bqkv[2 * d_model:3 * d_model].reshape(1, d_model)
    bout2 = bout.reshape(1, d_model)

    kernel = functools.partial(mhsa_kernel, num_heads=num_heads,
                               d_state=d_state, tq=tq)

    # Explicit VMEM budget sized from the working set (double-buffered blocks,
    # K/V scratch, f32 score/temporary tiles), clamped for v7x's 64 MiB.
    isz = x.dtype.itemsize
    wsz = wqkv.dtype.itemsize
    est = (2 * ncols * d_model * isz                 # x block (double buffered)
           + 2 * 4 * d_model * d_model * wsz         # wq, wk, wv, wout
           + 2 * 4 * d_model * 4                     # biases
           + 2 * 2 * tq * d_model * isz              # output block
           + 2 * ncols * d_model * isz               # K/V scratch
           + 6 * tq * ncols * 4                      # score temporaries (f32)
           + 4 * tq * d_model * 4)                   # q / accumulators (f32)
    vmem_limit = int(min(max(2 * est, 8 << 20), 64 << 20))

    grid_spec = pltpu.PrefetchScalarGridSpec(
        num_scalar_prefetch=0,
        grid=(bs, n_q),
        in_specs=[
            pl.BlockSpec((1, ncols, d_model), lambda b, qi: (b, 0, 0)),  # x (full seq)
            pl.BlockSpec((d_model, d_model), lambda b, qi: (0, 0)),      # wq
            pl.BlockSpec((1, d_model), lambda b, qi: (0, 0)),            # bq
            pl.BlockSpec((d_model, d_model), lambda b, qi: (0, 0)),      # wk
            pl.BlockSpec((1, d_model), lambda b, qi: (0, 0)),            # bk
            pl.BlockSpec((d_model, d_model), lambda b, qi: (0, 0)),      # wv
            pl.BlockSpec((1, d_model), lambda b, qi: (0, 0)),            # bv
            pl.BlockSpec((d_model, d_model), lambda b, qi: (0, 0)),      # wout
            pl.BlockSpec((1, d_model), lambda b, qi: (0, 0)),            # bout
        ],
        out_specs=pl.BlockSpec((1, tq, d_model), lambda b, qi: (b, qi, 0)),
        scratch_shapes=[
            pltpu.VMEM((ncols, d_model), x.dtype),   # K (projected, full seq)
            pltpu.VMEM((ncols, d_model), x.dtype),   # V (projected, full seq)
        ],
    )

    return pl.pallas_call(
        kernel,
        out_shape=jax.ShapeDtypeStruct((bs, ncols, d_model), x.dtype),
        grid_spec=grid_spec,
        compiler_params=pltpu.CompilerParams(
            dimension_semantics=("parallel", "arbitrary"),
            vmem_limit_bytes=vmem_limit),
    )(x, wq, bq, wk, bk, wv, bv, wout, bout2)


def reference_mhsa(x, wqkv, bqkv, wout, bout, num_heads):
    """Pure-JAX reference mirroring the PyTorch forward."""
    bs, ncols, d_model = x.shape
    d_state = d_model // num_heads
    qkv = jnp.einsum('bnd,de->bne', x, wqkv) + bqkv

    def split_heads(t):
        return t.reshape(bs, ncols, num_heads, d_state).transpose(0, 2, 1, 3)

    q, k, v = jnp.split(qkv, 3, axis=-1)
    q, k, v = split_heads(q), split_heads(k), split_heads(v)
    scores = jnp.einsum('bhqd,bhkd->bhqk', q, k) / jnp.sqrt(float(d_state))
    m = causal_mask(ncols)
    scores = scores * m - (1.0 - m) * 1.0e10
    attn = jax.nn.softmax(scores, axis=-1)
    out = jnp.einsum('bhqk,bhkd->bhqd', attn, v)
    out = out.transpose(0, 2, 1, 3).reshape(bs, ncols, d_model)
    return jnp.einsum('bnd,de->bne', out, wout) + bout


if __name__ == "__main__":
    # Small shapes consistent with the module: x: [bs, ncols, d_model]
    bs, ncols, d_model, num_heads = 2, 8, 32, 4

    key = jax.random.PRNGKey(0)
    kx, kw1, kw2 = jax.random.split(key, 3)

    x = jax.random.normal(kx, (bs, ncols, d_model), dtype=jnp.float32)

    # Conv1d init: w ~ N(0, 0.02), b = 0 (deterministic via PRNGKey(0) splits).
    wqkv = 0.02 * jax.random.normal(kw1, (d_model, 3 * d_model), jnp.float32)
    bqkv = jnp.zeros((3 * d_model,), jnp.float32)
    wout = 0.02 * jax.random.normal(kw2, (d_model, d_model), jnp.float32)
    bout = jnp.zeros((d_model,), jnp.float32)

    out = multi_head_self_attention(x, wqkv, bqkv, wout, bout, num_heads)
    out = jax.block_until_ready(out)

    ref = reference_mhsa(x, wqkv, bqkv, wout, bout, num_heads)
    assert out.shape == (bs, ncols, d_model)
    assert jnp.allclose(out, ref, atol=1e-4, rtol=1e-4)

    print("KERNEL_OK")
</pallas_src>

<mosaic_0001>
module attributes {stable_mosaic.version = 11 : i64} {
  func.func @mhsa_kernel(%arg0: i32, %arg1: i32, %arg2: memref<1x8x32xf32, #tpu.memory_space<vmem>>, %arg3: memref<32x32xf32, #tpu.memory_space<vmem>>, %arg4: memref<1x32xf32, #tpu.memory_space<vmem>>, %arg5: memref<32x32xf32, #tpu.memory_space<vmem>>, %arg6: memref<1x32xf32, #tpu.memory_space<vmem>>, %arg7: memref<32x32xf32, #tpu.memory_space<vmem>>, %arg8: memref<1x32xf32, #tpu.memory_space<vmem>>, %arg9: memref<32x32xf32, #tpu.memory_space<vmem>>, %arg10: memref<1x32xf32, #tpu.memory_space<vmem>>, %arg11: memref<1x8x32xf32, #tpu.memory_space<vmem>>, %arg12: memref<8x32xf32, #tpu.memory_space<vmem>>, %arg13: memref<8x32xf32, #tpu.memory_space<vmem>>) attributes {dimension_semantics = [#tpu.dimension_semantics<parallel>, #tpu.dimension_semantics<arbitrary>], iteration_bounds = array<i64: 2, 1>, scalar_prefetch = 0 : i64, scratch_operands = 2 : i64, tpu.core_type = #tpu.core_type<tc>, window_params = [{transform_indices = @transform_0, window_bounds = array<i64: 1, 8, 32>}, {pipeline_mode = #tpu.pipeline_mode<synchronous>, transform_indices = @transform_1, window_bounds = array<i64: 32, 32>}, {pipeline_mode = #tpu.pipeline_mode<synchronous>, transform_indices = @transform_2, window_bounds = array<i64: 1, 32>}, {pipeline_mode = #tpu.pipeline_mode<synchronous>, transform_indices = @transform_3, window_bounds = array<i64: 32, 32>}, {pipeline_mode = #tpu.pipeline_mode<synchronous>, transform_indices = @transform_4, window_bounds = array<i64: 1, 32>}, {pipeline_mode = #tpu.pipeline_mode<synchronous>, transform_indices = @transform_5, window_bounds = array<i64: 32, 32>}, {pipeline_mode = #tpu.pipeline_mode<synchronous>, transform_indices = @transform_6, window_bounds = array<i64: 1, 32>}, {pipeline_mode = #tpu.pipeline_mode<synchronous>, transform_indices = @transform_7, window_bounds = array<i64: 32, 32>}, {pipeline_mode = #tpu.pipeline_mode<synchronous>, transform_indices = @transform_8, window_bounds = array<i64: 1, 32>}, {transform_indices = @transform_9, window_bounds = array<i64: 1, 8, 32>}]} {
    %c0_i32 = arith.constant 0 : i32
    %0 = arith.cmpi eq, %arg1, %c0_i32 : i32
    %1 = arith.extui %0 : i1 to i32
    %c0_i32_0 = arith.constant 0 : i32
    %2 = arith.cmpi ne, %1, %c0_i32_0 : i32
    scf.if %2 {
      %c0_58 = arith.constant 0 : index
      %c0_59 = arith.constant 0 : index
      %c0_60 = arith.constant 0 : index
      %107 = vector.load %arg2[%c0_58, %c0_59, %c0_60] : memref<1x8x32xf32, #tpu.memory_space<vmem>>, vector<1x8x32xf32>
      %108 = vector.shape_cast %107 : vector<1x8x32xf32> to vector<8x32xf32>
      %c0_61 = arith.constant 0 : index
      %c0_62 = arith.constant 0 : index
      %109 = vector.load %arg5[%c0_61, %c0_62] : memref<32x32xf32, #tpu.memory_space<vmem>>, vector<32x32xf32>
      %cst_63 = arith.constant dense<0.000000e+00> : vector<8x32xf32>
      %110 = tpu.matmul %108, %109, %cst_63 {dimension_numbers = #tpu.dot_dimension_numbers<[1], [0], [0], [1], [0, 0, 1, 1], [], []>} : vector<8x32xf32>, vector<32x32xf32>, vector<8x32xf32> -> vector<8x32xf32>
      %c0_64 = arith.constant 0 : index
      %c0_65 = arith.constant 0 : index
      %111 = vector.load %arg6[%c0_64, %c0_65] : memref<1x32xf32, #tpu.memory_space<vmem>>, vector<1x32xf32>
      %112 = vector.broadcast %111 : vector<1x32xf32> to vector<8x32xf32>
      %113 = arith.addf %110, %112 : vector<8x32xf32>
      %c0_66 = arith.constant 0 : index
      %c0_67 = arith.constant 0 : index
      %114 = vector.load %arg7[%c0_66, %c0_67] : memref<32x32xf32, #tpu.memory_space<vmem>>, vector<32x32xf32>
      %cst_68 = arith.constant dense<0.000000e+00> : vector<8x32xf32>
      %115 = tpu.matmul %108, %114, %cst_68 {dimension_numbers = #tpu.dot_dimension_numbers<[1], [0], [0], [1], [0, 0, 1, 1], [], []>} : vector<8x32xf32>, vector<32x32xf32>, vector<8x32xf32> -> vector<8x32xf32>
      %c0_69 = arith.constant 0 : index
      %c0_70 = arith.constant 0 : index
      %116 = vector.load %arg8[%c0_69, %c0_70] : memref<1x32xf32, #tpu.memory_space<vmem>>, vector<1x32xf32>
      %117 = vector.broadcast %116 : vector<1x32xf32> to vector<8x32xf32>
      %118 = arith.addf %115, %117 : vector<8x32xf32>
      %c0_71 = arith.constant 0 : index
      %c0_72 = arith.constant 0 : index
      %119 = vector.load %arg12[%c0_71, %c0_72] : memref<8x32xf32, #tpu.memory_space<vmem>>, vector<8x32xf32>
      tpu.vector_store %arg12[%c0_71, %c0_72], %113 {strides = array<i32>} : memref<8x32xf32, #tpu.memory_space<vmem>>, vector<8x32xf32>,
      %c0_73 = arith.constant 0 : index
      %c0_74 = arith.constant 0 : index
      %120 = vector.load %arg13[%c0_73, %c0_74] : memref<8x32xf32, #tpu.memory_space<vmem>>, vector<8x32xf32>
      tpu.vector_store %arg13[%c0_73, %c0_74], %118 {strides = array<i32>} : memref<8x32xf32, #tpu.memory_space<vmem>>, vector<8x32xf32>,
    } else {
    }
    %c8_i32 = arith.constant 8 : i32
    %3 = arith.muli %arg1, %c8_i32 : i32
    %4 = tpu.assume_multiple %3, 8 : i32
    %c0 = arith.constant 0 : index
    %5 = arith.index_cast %4 : i32 to index
    %c0_1 = arith.constant 0 : index
    %6 = vector.load %arg2[%c0, %5, %c0_1] : memref<1x8x32xf32, #tpu.memory_space<vmem>>, vector<1x8x32xf32>
    %7 = vector.shape_cast %6 : vector<1x8x32xf32> to vector<8x32xf32>
    %c0_2 = arith.constant 0 : index
    %c0_3 = arith.constant 0 : index
    %8 = vector.load %arg3[%c0_2, %c0_3] : memref<32x32xf32, #tpu.memory_space<vmem>>, vector<32x32xf32>
    %cst = arith.constant dense<0.000000e+00> : vector<8x32xf32>
    %9 = tpu.matmul %7, %8, %cst {dimension_numbers = #tpu.dot_dimension_numbers<[1], [0], [0], [1], [0, 0, 1, 1], [], []>} : vector<8x32xf32>, vector<32x32xf32>, vector<8x32xf32> -> vector<8x32xf32>
    %c0_4 = arith.constant 0 : index
    %c0_5 = arith.constant 0 : index
    %10 = vector.load %arg4[%c0_4, %c0_5] : memref<1x32xf32, #tpu.memory_space<vmem>>, vector<1x32xf32>
    %11 = vector.broadcast %10 : vector<1x32xf32> to vector<8x32xf32>
    %12 = arith.addf %9, %11 : vector<8x32xf32>
    %cst_6 = arith.constant 0.353553385 : f32
    %13 = vector.broadcast %cst_6 : f32 to vector<8x32xf32>
    %14 = arith.mulf %12, %13 : vector<8x32xf32>
    %15 = tpu.iota {dimensions = array<i32: 0>} : vector<8x8xi32>
    %16 = vector.broadcast %4 : i32 to vector<8x8xi32>
    %17 = arith.addi %16, %15 : vector<8x8xi32>
    %18 = tpu.iota {dimensions = array<i32: 1>} : vector<8x8xi32>
    %19 = arith.cmpi sge, %17, %18 : vector<8x8xi32>
    %cst_7 = arith.constant 0.000000e+00 : f32
    %20 = vector.broadcast %cst_7 : f32 to vector<8x32xf32>
    %21 = vector.extract_strided_slice %14 {offsets = [0, 0], sizes = [8, 8], strides = [1, 1]} : vector<8x32xf32> to vector<8x8xf32>
    %c0_8 = arith.constant 0 : index
    %c0_9 = arith.constant 0 : index
    %22 = vector.load %arg12[%c0_8, %c0_9] : memref<8x32xf32, #tpu.memory_space<vmem>>, vector<8x8xf32>
    %c0_10 = arith.constant 0 : index
    %c0_11 = arith.constant 0 : index
    %23 = vector.load %arg13[%c0_10, %c0_11] : memref<8x32xf32, #tpu.memory_space<vmem>>, vector<8x8xf32>
    %cst_12 = arith.constant dense<0.000000e+00> : vector<8x8xf32>
    %24 = tpu.matmul %21, %22, %cst_12 {dimension_numbers = #tpu.dot_dimension_numbers<[1], [1], [0], [0], [0, 0, 1, 0], [], []>} : vector<8x8xf32>, vector<8x8xf32>, vector<8x8xf32> -> vector<8x8xf32>
    %cst_13 = arith.constant -1.000000e+10 : f32
    %25 = vector.broadcast %cst_13 : f32 to vector<8x8xf32>
    %26 = arith.select %19, %24, %25 : vector<8x8xi1>, vector<8x8xf32>
    %cst_14 = arith.constant dense<0xFF800000> : vector<8xf32>
    %27 = vector.multi_reduction <maximumf>, %26, %cst_14 [1] : vector<8x8xf32> to vector<8xf32>
    %28 = vector.shape_cast %27 : vector<8xf32> to vector<8x1xf32>
    %29 = vector.broadcast %28 : vector<8x1xf32> to vector<8x8xf32>
    %30 = arith.subf %26, %29 : vector<8x8xf32>
    %31 = math.exp %30 : vector<8x8xf32>
    %cst_15 = arith.constant dense<0.000000e+00> : vector<8xf32>
    %32 = vector.multi_reduction <add>, %31, %cst_15 [1] : vector<8x8xf32> to vector<8xf32>
    %33 = vector.shape_cast %32 : vector<8xf32> to vector<8x1xf32>
    %34 = tpu.reciprocal %33 {approx = true} : vector<8x1xf32> -> vector<8x1xf32>
    %35 = vector.broadcast %34 : vector<8x1xf32> to vector<8x8xf32>
    %36 = arith.mulf %31, %35 : vector<8x8xf32>
    %cst_16 = arith.constant dense<0.000000e+00> : vector<8x8xf32>
    %37 = tpu.matmul %36, %23, %cst_16 {dimension_numbers = #tpu.dot_dimension_numbers<[1], [0], [0], [1], [0, 0, 1, 1], [], []>} : vector<8x8xf32>, vector<8x8xf32>, vector<8x8xf32> -> vector<8x8xf32>
    %c0_17 = arith.constant 0 : index
    %c0_18 = arith.constant 0 : index
    %38 = vector.load %arg9[%c0_17, %c0_18] : memref<32x32xf32, #tpu.memory_space<vmem>>, vector<8x32xf32>
    %cst_19 = arith.constant dense<0.000000e+00> : vector<8x32xf32>
    %39 = tpu.matmul %37, %38, %cst_19 {dimension_numbers = #tpu.dot_dimension_numbers<[1], [0], [0], [1], [0, 0, 1, 1], [], []>} : vector<8x8xf32>, vector<8x32xf32>, vector<8x32xf32> -> vector<8x32xf32>
    %40 = arith.addf %20, %39 : vector<8x32xf32>
    %41 = vector.extract_strided_slice %14 {offsets = [0, 8], sizes = [8, 8], strides = [1, 1]} : vector<8x32xf32> to vector<8x8xf32>
    %c0_20 = arith.constant 0 : index
    %c8 = arith.constant 8 : index
    %42 = vector.load %arg12[%c0_20, %c8] : memref<8x32xf32, #tpu.memory_space<vmem>>, vector<8x8xf32>
    %c0_21 = arith.constant 0 : index
    %c8_22 = arith.constant 8 : index
    %43 = vector.load %arg13[%c0_21, %c8_22] : memref<8x32xf32, #tpu.memory_space<vmem>>, vector<8x8xf32>
    %cst_23 = arith.constant dense<0.000000e+00> : vector<8x8xf32>
    %44 = tpu.matmul %41, %42, %cst_23 {dimension_numbers = #tpu.dot_dimension_numbers<[1], [1], [0], [0], [0, 0, 1, 0], [], []>} : vector<8x8xf32>, vector<8x8xf32>, vector<8x8xf32> -> vector<8x8xf32>
    %cst_24 = arith.constant -1.000000e+10 : f32
    %45 = vector.broadcast %cst_24 : f32 to vector<8x8xf32>
    %46 = arith.select %19, %44, %45 : vector<8x8xi1>, vector<8x8xf32>
    %cst_25 = arith.constant dense<0xFF800000> : vector<8xf32>
    %47 = vector.multi_reduction <maximumf>, %46, %cst_25 [1] : vector<8x8xf32> to vector<8xf32>
    %48 = vector.shape_cast %47 : vector<8xf32> to vector<8x1xf32>
    %49 = vector.broadcast %48 : vector<8x1xf32> to vector<8x8xf32>
    %50 = arith.subf %46, %49 : vector<8x8xf32>
    %51 = math.exp %50 : vector<8x8xf32>
    %cst_26 = arith.constant dense<0.000000e+00> : vector<8xf32>
    %52 = vector.multi_reduction <add>, %51, %cst_26 [1] : vector<8x8xf32> to vector<8xf32>
    %53 = vector.shape_cast %52 : vector<8xf32> to vector<8x1xf32>
    %54 = tpu.reciprocal %53 {approx = true} : vector<8x1xf32> -> vector<8x1xf32>
    %55 = vector.broadcast %54 : vector<8x1xf32> to vector<8x8xf32>
    %56 = arith.mulf %51, %55 : vector<8x8xf32>
    %cst_27 = arith.constant dense<0.000000e+00> : vector<8x8xf32>
    %57 = tpu.matmul %56, %43, %cst_27 {dimension_numbers = #tpu.dot_dimension_numbers<[1], [0], [0], [1], [0, 0, 1, 1], [], []>} : vector<8x8xf32>, vector<8x8xf32>, vector<8x8xf32> -> vector<8x8xf32>
    %c8_28 = arith.constant 8 : index
    %c0_29 = arith.constant 0 : index
    %58 = vector.load %arg9[%c8_28, %c0_29] : memref<32x32xf32, #tpu.memory_space<vmem>>, vector<8x32xf32>
    %cst_30 = arith.constant dense<0.000000e+00> : vector<8x32xf32>
    %59 = tpu.matmul %57, %58, %cst_30 {dimension_numbers = #tpu.dot_dimension_numbers<[1], [0], [0], [1], [0, 0, 1, 1], [], []>} : vector<8x8xf32>, vector<8x32xf32>, vector<8x32xf32> -> vector<8x32xf32>
    %60 = arith.addf %40, %59 : vector<8x32xf32>
    %61 = vector.extract_strided_slice %14 {offsets = [0, 16], sizes = [8, 8], strides = [1, 1]} : vector<8x32xf32> to vector<8x8xf32>
    %c0_31 = arith.constant 0 : index
    %c16 = arith.constant 16 : index
    %62 = vector.load %arg12[%c0_31, %c16] : memref<8x32xf32, #tpu.memory_space<vmem>>, vector<8x8xf32>
    %c0_32 = arith.constant 0 : index
    %c16_33 = arith.constant 16 : index
    %63 = vector.load %arg13[%c0_32, %c16_33] : memref<8x32xf32, #tpu.memory_space<vmem>>, vector<8x8xf32>
    %cst_34 = arith.constant dense<0.000000e+00> : vector<8x8xf32>
    %64 = tpu.matmul %61, %62, %cst_34 {dimension_numbers = #tpu.dot_dimension_numbers<[1], [1], [0], [0], [0, 0, 1, 0], [], []>} : vector<8x8xf32>, vector<8x8xf32>, vector<8x8xf32> -> vector<8x8xf32>
    %cst_35 = arith.constant -1.000000e+10 : f32
    %65 = vector.broadcast %cst_35 : f32 to vector<8x8xf32>
    %66 = arith.select %19, %64, %65 : vector<8x8xi1>, vector<8x8xf32>
    %cst_36 = arith.constant dense<0xFF800000> : vector<8xf32>
    %67 = vector.multi_reduction <maximumf>, %66, %cst_36 [1] : vector<8x8xf32> to vector<8xf32>
    %68 = vector.shape_cast %67 : vector<8xf32> to vector<8x1xf32>
    %69 = vector.broadcast %68 : vector<8x1xf32> to vector<8x8xf32>
    %70 = arith.subf %66, %69 : vector<8x8xf32>
    %71 = math.exp %70 : vector<8x8xf32>
    %cst_37 = arith.constant dense<0.000000e+00> : vector<8xf32>
    %72 = vector.multi_reduction <add>, %71, %cst_37 [1] : vector<8x8xf32> to vector<8xf32>
    %73 = vector.shape_cast %72 : vector<8xf32> to vector<8x1xf32>
    %74 = tpu.reciprocal %73 {approx = true} : vector<8x1xf32> -> vector<8x1xf32>
    %75 = vector.broadcast %74 : vector<8x1xf32> to vector<8x8xf32>
    %76 = arith.mulf %71, %75 : vector<8x8xf32>
    %cst_38 = arith.constant dense<0.000000e+00> : vector<8x8xf32>
    %77 = tpu.matmul %76, %63, %cst_38 {dimension_numbers = #tpu.dot_dimension_numbers<[1], [0], [0], [1], [0, 0, 1, 1], [], []>} : vector<8x8xf32>, vector<8x8xf32>, vector<8x8xf32> -> vector<8x8xf32>
    %c16_39 = arith.constant 16 : index
    %c0_40 = arith.constant 0 : index
    %78 = vector.load %arg9[%c16_39, %c0_40] : memref<32x32xf32, #tpu.memory_space<vmem>>, vector<8x32xf32>
    %cst_41 = arith.constant dense<0.000000e+00> : vector<8x32xf32>
    %79 = tpu.matmul %77, %78, %cst_41 {dimension_numbers = #tpu.dot_dimension_numbers<[1], [0], [0], [1], [0, 0, 1, 1], [], []>} : vector<8x8xf32>, vector<8x32xf32>, vector<8x32xf32> -> vector<8x32xf32>
    %80 = arith.addf %60, %79 : vector<8x32xf32>
    %81 = vector.extract_strided_slice %14 {offsets = [0, 24], sizes = [8, 8], strides = [1, 1]} : vector<8x32xf32> to vector<8x8xf32>
    %c0_42 = arith.constant 0 : index
    %c24 = arith.constant 24 : index
    %82 = vector.load %arg12[%c0_42, %c24] : memref<8x32xf32, #tpu.memory_space<vmem>>, vector<8x8xf32>
    %c0_43 = arith.constant 0 : index
    %c24_44 = arith.constant 24 : index
    %83 = vector.load %arg13[%c0_43, %c24_44] : memref<8x32xf32, #tpu.memory_space<vmem>>, vector<8x8xf32>
    %cst_45 = arith.constant dense<0.000000e+00> : vector<8x8xf32>
    %84 = tpu.matmul %81, %82, %cst_45 {dimension_numbers = #tpu.dot_dimension_numbers<[1], [1], [0], [0], [0, 0, 1, 0], [], []>} : vector<8x8xf32>, vector<8x8xf32>, vector<8x8xf32> -> vector<8x8xf32>
    %cst_46 = arith.constant -1.000000e+10 : f32
    %85 = vector.broadcast %cst_46 : f32 to vector<8x8xf32>
    %86 = arith.select %19, %84, %85 : vector<8x8xi1>, vector<8x8xf32>
    %cst_47 = arith.constant dense<0xFF800000> : vector<8xf32>
    %87 = vector.multi_reduction <maximumf>, %86, %cst_47 [1] : vector<8x8xf32> to vector<8xf32>
    %88 = vector.shape_cast %87 : vector<8xf32> to vector<8x1xf32>
    %89 = vector.broadcast %88 : vector<8x1xf32> to vector<8x8xf32>
    %90 = arith.subf %86, %89 : vector<8x8xf32>
    %91 = math.exp %90 : vector<8x8xf32>
    %cst_48 = arith.constant dense<0.000000e+00> : vector<8xf32>
    %92 = vector.multi_reduction <add>, %91, %cst_48 [1] : vector<8x8xf32> to vector<8xf32>
    %93 = vector.shape_cast %92 : vector<8xf32> to vector<8x1xf32>
    %94 = tpu.reciprocal %93 {approx = true} : vector<8x1xf32> -> vector<8x1xf32>
    %95 = vector.broadcast %94 : vector<8x1xf32> to vector<8x8xf32>
    %96 = arith.mulf %91, %95 : vector<8x8xf32>
    %cst_49 = arith.constant dense<0.000000e+00> : vector<8x8xf32>
    %97 = tpu.matmul %96, %83, %cst_49 {dimension_numbers = #tpu.dot_dimension_numbers<[1], [0], [0], [1], [0, 0, 1, 1], [], []>} : vector<8x8xf32>, vector<8x8xf32>, vector<8x8xf32> -> vector<8x8xf32>
    %c24_50 = arith.constant 24 : index
    %c0_51 = arith.constant 0 : index
    %98 = vector.load %arg9[%c24_50, %c0_51] : memref<32x32xf32, #tpu.memory_space<vmem>>, vector<8x32xf32>
    %cst_52 = arith.constant dense<0.000000e+00> : vector<8x32xf32>
    %99 = tpu.matmul %97, %98, %cst_52 {dimension_numbers = #tpu.dot_dimension_numbers<[1], [0], [0], [1], [0, 0, 1, 1], [], []>} : vector<8x8xf32>, vector<8x32xf32>, vector<8x32xf32> -> vector<8x32xf32>
    %100 = arith.addf %80, %99 : vector<8x32xf32>
    %c0_53 = arith.constant 0 : index
    %c0_54 = arith.constant 0 : index
    %101 = vector.load %arg10[%c0_53, %c0_54] : memref<1x32xf32, #tpu.memory_space<vmem>>, vector<1x32xf32>
    %102 = vector.broadcast %101 : vector<1x32xf32> to vector<8x32xf32>
    %103 = arith.addf %100, %102 : vector<8x32xf32>
    %c0_55 = arith.constant 0 : index
    %c0_56 = arith.constant 0 : index
    %c0_57 = arith.constant 0 : index
    %104 = vector.load %arg11[%c0_55, %c0_56, %c0_57] : memref<1x8x32xf32, #tpu.memory_space<vmem>>, vector<1x8x32xf32>
    %105 = vector.shape_cast %104 : vector<1x8x32xf32> to vector<8x32xf32>
    %106 = vector.shape_cast %103 : vector<8x32xf32> to vector<1x8x32xf32>
    tpu.vector_store %arg11[%c0_55, %c0_56, %c0_57], %106 {strides = array<i32>} : memref<1x8x32xf32, #tpu.memory_space<vmem>>, vector<1x8x32xf32>,
    return
  }
  func.func @transform_0(%arg0: i32, %arg1: i32) -> (i32, i32, i32) {
    %c0_i32 = arith.constant 0 : i32
    %c0_i32_0 = arith.constant 0 : i32
    %c0_i32_1 = arith.constant 0 : i32
    return %arg0, %c0_i32, %c0_i32_0 : i32, i32, i32
  }
  func.func @transform_1(%arg0: i32, %arg1: i32) -> (i32, i32) {
    %c0_i32 = arith.constant 0 : i32
    %c0_i32_0 = arith.constant 0 : i32
    %c0_i32_1 = arith.constant 0 : i32
    return %c0_i32, %c0_i32_0 : i32, i32
  }
  func.func @transform_2(%arg0: i32, %arg1: i32) -> (i32, i32) {
    %c0_i32 = arith.constant 0 : i32
    %c0_i32_0 = arith.constant 0 : i32
    %c0_i32_1 = arith.constant 0 : i32
    return %c0_i32, %c0_i32_0 : i32, i32
  }
  func.func @transform_3(%arg0: i32, %arg1: i32) -> (i32, i32) {
    %c0_i32 = arith.constant 0 : i32
    %c0_i32_0 = arith.constant 0 : i32
    %c0_i32_1 = arith.constant 0 : i32
    return %c0_i32, %c0_i32_0 : i32, i32
  }
  func.func @transform_4(%arg0: i32, %arg1: i32) -> (i32, i32) {
    %c0_i32 = arith.constant 0 : i32
    %c0_i32_0 = arith.constant 0 : i32
    %c0_i32_1 = arith.constant 0 : i32
    return %c0_i32, %c0_i32_0 : i32, i32
  }
  func.func @transform_5(%arg0: i32, %arg1: i32) -> (i32, i32) {
    %c0_i32 = arith.constant 0 : i32
    %c0_i32_0 = arith.constant 0 : i32
    %c0_i32_1 = arith.constant 0 : i32
    return %c0_i32, %c0_i32_0 : i32, i32
  }
  func.func @transform_6(%arg0: i32, %arg1: i32) -> (i32, i32) {
    %c0_i32 = arith.constant 0 : i32
    %c0_i32_0 = arith.constant 0 : i32
    %c0_i32_1 = arith.constant 0 : i32
    return %c0_i32, %c0_i32_0 : i32, i32
  }
  func.func @transform_7(%arg0: i32, %arg1: i32) -> (i32, i32) {
    %c0_i32 = arith.constant 0 : i32
    %c0_i32_0 = arith.constant 0 : i32
    %c0_i32_1 = arith.constant 0 : i32
    return %c0_i32, %c0_i32_0 : i32, i32
  }
  func.func @transform_8(%arg0: i32, %arg1: i32) -> (i32, i32) {
    %c0_i32 = arith.constant 0 : i32
    %c0_i32_0 = arith.constant 0 : i32
    %c0_i32_1 = arith.constant 0 : i32
    return %c0_i32, %c0_i32_0 : i32, i32
  }
  func.func @transform_9(%arg0: i32, %arg1: i32) -> (i32, i32, i32) {
    %c0_i32 = arith.constant 0 : i32
    %c0_i32_0 = arith.constant 0 : i32
    return %arg0, %arg1, %c0_i32 : i32, i32, i32
  }
}

</mosaic_0001>

<bundles_post_ra>
// kernel: tpu_custom_call.1
= control target key start
LH: loop header
LB: loop body
LE: loop exit
PB: predicated region body
PF: predicated region fallthrough
CT: control target
= control target key end

     0   :  { %s2730_s0 = inlined_call_operand.hbm [shape: f32[2,8,32], index: 0, kind: input, shape index: {}]   ;;  %s2731_s1 = inlined_call_operand.hbm [shape: f32[32,32], index: 1, kind: input, shape index: {}]   ;;  %s2732_s2 = inlined_call_operand.vmem [shape: f32[1,32], index: 2, kind: input, shape index: {}]   ;;  %s2733_s3 = inlined_call_operand.hbm [shape: f32[32,32], index: 3, kind: input, shape index: {}]   ;;  %s2734_s4 = inlined_call_operand.vmem [shape: f32[1,32], index: 4, kind: input, shape index: {}]   ;;  %s2735_s5 = inlined_call_operand.hbm [shape: f32[32,32], index: 5, kind: input, shape index: {}]   ;;  %s2736_s6 = inlined_call_operand.vmem [shape: f32[1,32], index: 6, kind: input, shape index: {}]   ;;  %s2737_s7 = inlined_call_operand.hbm [shape: f32[32,32], index: 7, kind: input, shape index: {}]   ;;  %s2738_s8 = inlined_call_operand.vmem [shape: f32[1,32], index: 8, kind: input, shape index: {}]   ;;  %s2739_s9 = inlined_call_operand.hbm [shape: f32[2,8,32], index: 9, kind: output, shape index: {}]  }
   0x1   :  { %2742 = sst [smem:[#allocation20_spill]] %s2731_s1 }
   0x2   :  { %2743 = sst [smem:[#allocation21_spill]] %s2733_s3 }
   0x3   :  { %2744 = sst [smem:[#allocation22_spill]] %s2735_s5 }
   0x4   :  { %2745 = sst [smem:[#allocation23_spill]] %s2737_s7 }
   0x5   :  { %14 = vsyncpa [#allocation5], 0 }
   0x6   :  { %16 = vsyncpa [#allocation5 + $0x1], 0 }
   0x7   :  { %17 = vsyncpa [#allocation8], 0 }
   0x8   :  { %18 = vsyncpa [#allocation11], 0 }
   0x9   :  { %19 = vsyncpa [#allocation6], 0 }
   0xa   :  { %21 = vsyncpa [#allocation6 + $0x1], 0  ;;  %s2380_s30 = smov 0   ;;  %s2382_s10 = smov 0  }
   0xb   :  { %s2384_s11 = smov 0   ;;  %s2386_s12 = smov 0  }
   0xc   :  { %s2388_s13 = smov 0   ;;  %s2390_s14 = smov 0  }
   0xd LB: > { %2746 = sst [smem:[#allocation18_spill]] %s2311_s13  ;;  %s1793_s15 = sadd.s32 4294967295, %s2315_s14   ;;  %s2315_s14 = sphi %s2390_s14, %s27_s14   ;;  %s2311_s13 = sphi %s2388_s13, %s2763_s13   ;;  %s2307_s12 = sphi %s2386_s12, %s2762_s12   ;;  %s2303_s11 = sphi %s2384_s11, %s2766_s11   ;;  %s2299_s10 = sphi %s2382_s10, %s2765_s10   ;;  %s2295_s30 = sphi %s2380_s30, %s2764_s30  }
   0xe   : > { %p1795_p0 = scmp.ge.s32.totalorder %s2315_s14, 1  ;;  %p2414_p1 = scmp.eq.s32.totalorder %s1793_s15, 0 }
   0xf   : > { %p266_p2 = scmp.lt.s32.totalorder %s2315_s14, 3  ;;  %s2317_s18 = smov [#allocation7]  }
  0x10   : > { %s278_s19 = sshll.u32 %s2317_s18, 4  ;;  %s2318_s21 = smov [#allocation10]   ;;  %s279_s19 = int_to_ptr.vmem [resolvable:$true] %s278_s19 }
  0x11   : > { %p2419_p3 = pnand %p1795_p0, %p266_p2  ;;  %s310_s22 = sshll.u32 %s2318_s21, 4  ;;  %s311_s22 = int_to_ptr.vmem [resolvable:$true] %s310_s22 }
  0x12   : > { %s2319_s23 = smov [#allocation9]   ;;  %s2106_s25 = scalar_lea.vmem %s279_s19, 512 }
  0x13   : > { %p1989_p4 = pneg %p2419_p3  ;;  %s294_s24 = sshll.u32 %s2319_s23, 4  ;;  %s295_s24 = int_to_ptr.vmem [resolvable:$true] %s294_s24 }
  0x14   : > { %p2107_p8 = scmp.ne.s32.totalorder %s279_s19, %s2106_s25  ;;  %p2114_p11 = scmp.lt.s32.totalorder %s279_s19, %s279_s19 }
  0x15   : > { %p2428_p6 = pnand %p1989_p4, %p2414_p1  ;;  %p2115_p12 = scmp.lt.s32.totalorder %s2106_s25, %s2106_s25 }
  0x17   : > { %p2097_p7 = pneg %p2428_p6  ;;  %p2116_p13 = por %p2115_p12, %p2114_p11 }
  0x19   : > { %p2109_p9 = pnand %p2107_p8, %p2097_p7 }
  0x1b   : > { %p2110_p10 = pneg %p2109_p9 }
  0x1d   : > { %p2117_p0 = pnand %p2116_p13, %p2110_p10 }
  0x1f   : > { %2120 = shalt.err (!%p2117_p0)
}
  0x20   : > { %s2320_s26 = smov 128   ;;  %s2321_s27 = smov 8  }
  0x21   : > { %s2750_s1 = sld [smem:[#allocation20_spill]]  ;;  %s2132_s18 = scalar_lea.vmem %s311_s22, 512 }
  0x22   : > { %p2133_p2 = scmp.ne.s32.totalorder %s311_s22, %s2132_s18  ;;  %p2140_p9 = scmp.lt.s32.totalorder %s311_s22, %s311_s22 }
  0x23   : > { %p2141_p10 = scmp.lt.s32.totalorder %s2132_s18, %s2132_s18 }
  0x24   : > { %p2135_p4 = pnand %p2133_p2, %p2097_p7 }
  0x25   : > { %p2142_p11 = por %p2141_p10, %p2140_p9 }
  0x26   : > { %p2136_p8 = pneg %p2135_p4 }
  0x27   : > { %1992 = dma.hbm_to_vmem [thread:$0]  (!%p2428_p6), %s2750_s1, 512, %s279_s19, [#allocation8], %s2320_s26, %s2320_s26, %s2321_s27  }
  0x28   : > { %p2143_p12 = pnand %p2142_p11, %p2136_p8 }
  0x2a   : > { %2146 = shalt.err (!%p2143_p12)
}
  0x2b   : > { %s2751_s5 = sld [smem:[#allocation22_spill]]  ;;  %s2158_s19 = scalar_lea.vmem %s295_s24, 512 }
  0x2c   : > { %p2159_p13 = scmp.ne.s32.totalorder %s295_s24, %s2158_s19  ;;  %p2166_p4 = scmp.lt.s32.totalorder %s295_s24, %s295_s24 }
  0x2d   : > { %p2167_p8 = scmp.lt.s32.totalorder %s2158_s19, %s2158_s19 }
  0x2e   : > { %p2161_p0 = pnand %p2159_p13, %p2097_p7 }
  0x2f   : > { %p2168_p9 = por %p2167_p8, %p2166_p4 }
  0x30   : > { %p2162_p2 = pneg %p2161_p0 }
  0x31   : > { %1998 = dma.hbm_to_vmem [thread:$0]  (!%p2428_p6), %s2751_s5, 512, %s311_s22, [#allocation11], %s2320_s26, %s2320_s26, %s2321_s27  }
  0x32   : > { %p2169_p10 = pnand %p2168_p9, %p2162_p2 }
  0x34   : > { %2172 = shalt.err (!%p2169_p10)
}
  0x35   : > { %s2752_s3 = sld [smem:[#allocation21_spill]]  ;;  %s2322_s22 = smov [#allocation12]  }
  0x36   : > { %s326_s29 = sshll.u32 %s2322_s22, 4  ;;  %s327_s29 = int_to_ptr.vmem [resolvable:$true] %s326_s29 }
  0x37   : > { %s2184_s18 = scalar_lea.vmem %s327_s29, 512  ;;  %p2192_p0 = scmp.lt.s32.totalorder %s327_s29, %s327_s29 }
  0x38   : > { %p2185_p11 = scmp.ne.s32.totalorder %s327_s29, %s2184_s18  ;;  %p2193_p2 = scmp.lt.s32.totalorder %s2184_s18, %s2184_s18 }
  0x3a   : > { %p2187_p12 = pnand %p2185_p11, %p2097_p7  ;;  %p2194_p4 = por %p2193_p2, %p2192_p0 }
  0x3b   : > { %1995 = dma.hbm_to_vmem [thread:$0]  (!%p2428_p6), %s2752_s3, 512, %s295_s24, [#allocation8], %s2320_s26, %s2320_s26, %s2321_s27  }
  0x3c   : > { %p2188_p13 = pneg %p2187_p12 }
  0x3e   : > { %p2195_p8 = pnand %p2194_p4, %p2188_p13 }
  0x40   : > { %2198 = shalt.err (!%p2195_p8)
}
  0x41   : > { %s2753_s7 = sld [smem:[#allocation23_spill]]  ;;  %s1794_s20 = sadd.s32 4294967294, %s2315_s14  }
  0x42   : > { %s39_s23 = sadd.s32 1, %s2311_s13  ;;  %s46_s19 = sadd.s32 1, %s2303_s11 }
  0x43   : > { %p41_p7 = scmp.ge.s32.totalorder %s39_s23, 2  ;;  %p53_p9 = scmp.ne.s32.totalorder %s2303_s11, %s2299_s10 }
  0x44   : > { %p54_p10 = scmp.eq.s32.totalorder %s2315_s14, 0  ;;  %p59_p12 = scmp.ne.s32.totalorder %s2299_s10, %s2295_s30 }
  0x45   : > { %s2768_s23 = smov (%p41_p7, %s39_s23), 0  ;;  %p259_p4 = scmp.eq.s32.totalorder %s1794_s20, 1 }
  0x46   : > { %2754 = sst [smem:[#allocation19_spill]] %s2768_s23  ;;  %p2486_p11 = por %p54_p10, %p53_p9 }
  0x47   : > { %2001 = dma.hbm_to_vmem [thread:$0]  (!%p2428_p6), %s2753_s7, 512, %s327_s29, [#allocation11], %s2320_s26, %s2320_s26, %s2321_s27  }
  0x48   : > { %s43_s26 = ssub.s32 %s2311_s13, %s2768_s23  ;;  %p253_p6 = scmp.eq.s32.totalorder %s1793_s15, 1 }
  0x49   : > { %p44_p13 = scmp.eq.s32.totalorder %s43_s26, 0  ;;  %p2498_p0 = por %p2414_p1, %p59_p12 }
  0x4a   : > { %p2502_p2 = por %p253_p6, %p53_p9  ;;  %p2509_p8 = por %p259_p4, %p59_p12 }
  0x4b   : > { %s2507_s22 = scalar_select %p44_p13, %s2303_s11, %s46_s19  }
  0x4c   : > { %s2758_s29 = scalar_select %p2509_p8, 1, 0 }
  0x4d   : > { %p2014_p7 = scmp.lt.s32.totalorder %s2315_s14, 2  ;;  %s343_s18 = sand.u32 1, %s2303_s11  }
  0x4e   : > { %s1802_s15 = sshll.u32 %s2311_s13, 7  ;;  %s1801_s24 = sshll.u32 %s343_s18, 3 }
  0x4f   : > { %s352_s1 = scalar_lea.hbm %s2730_s0, %s1802_s15  ;;  %s347_s3 = scalar_lea.vmem [#allocation4], %s1801_s24 }
  0x50   : > { %s354_s5 = sshll.u32 %s347_s3, 4  ;;  %p2521_p9 = pnand %p2014_p7, %p2486_p11  ;;  %s355_s5 = int_to_ptr.vmem [resolvable:$true] %s354_s5 }
  0x51   : > { %s344_s20 = scalar_lea.sflag [#allocation5], %s343_s18  ;;  %s2212_s19 = scalar_lea.vmem %s355_s5, 128 }
  0x52   : > { %p2201_p10 = pneg %p2521_p9  ;;  %p2213_p12 = scmp.ne.s32.totalorder %s355_s5, %s2212_s19 }
  0x53   : > { %s2323_s23 = smov [#allocation4]  }
  0x54   : > { %p2215_p6 = pnand %p2213_p12, %p2201_p10  ;;  %s2217_s13 = sshll.u32 %s2323_s23, 4  ;;  %s2218_s13 = int_to_ptr.vmem [resolvable:$false] %s2217_s13 }
  0x55   : > { %s2219_s15 = scalar_lea.vmem %s2218_s13, 256  ;;  %p2220_p4 = scmp.lt.s32.totalorder %s355_s5, %s2218_s13 }
  0x56   : > { %p2216_p13 = pneg %p2215_p6  ;;  %p2221_p5 = scmp.lt.s32.totalorder %s2219_s15, %s2212_s19 }
  0x58   : > { %p2222_p8 = por %p2221_p5, %p2220_p4 }
  0x5a   : > { %p2223_p11 = pnand %p2222_p8, %p2216_p13 }
  0x5c   : > { %2226 = shalt.err (!%p2223_p11)
}
  0x5d   : > { %2005 = dma.hbm_to_vmem [thread:$0]  (!%p2521_p9), %s352_s1, 128, %s355_s5, %s344_s20  }
  0x5e   : > { %363 = sbr.rel (%p2419_p3) target bundleno = 2558 (0x9fe), region = 56  ;;  %s2532_s3 = sand.u32 (!%p2419_p3), 1, %s2299_s10  }
  0x5f   : > { %s1804_s23 = sshll.u32 (!%p2419_p3), %s2532_s3, 3  ;;  %s366_s25 = scalar_lea.sflag (!%p2419_p3), [#allocation5], %s2532_s3 }
  0x60   : > { %s369_s13 = scalar_lea.vmem (!%p2419_p3), [#allocation4], %s1804_s23 }
  0x63   : > { %2278 = dma.done.wait (%p2498_p0), %s366_s25, 128  }
  0x64   : > { %2280 = vsyncadd (%p2498_p0), %s366_s25, 4294967168 }
  0x65   : > { %2282 = dma.done.wait (%p2414_p1), [#allocation8], 1024  }
  0x66   : > { %2284 = vsyncadd (%p2414_p1), [#allocation8], 4294966272 }
  0x67   : > { %2286 = dma.done.wait (%p2414_p1), [#allocation11], 1024  }
  0x68   : > { %2288 = vsyncadd (%p2414_p1), [#allocation11], 4294966272  ;;  %v2324_v0 = vmov 0.0   ;;  %vm2325_vm0 = vmmov 0   ;;  %v428_v1 = vld [vmem:[#allocation9 + $0x18] sm:$0xff]  ;;  %v427_v2 = vld [vmem:[#allocation9 + $0x10] sm:$0xff]  ;;  %v682_v30 = vlaneseq }
  0x69   : > { %1876 = vmatprep.subr.mxu0 %v2324_v0  ;;  %1884 = vmatprep.mubr.msk.f32.mxu0 %vm2325_vm0, %v2324_v0  ;;  %v426_v3 = vld [vmem:[#allocation9 + $0x8] sm:$0xff]  ;;  %v425_v4 = vld [vmem:[#allocation9] sm:$0xff]  ;;  %v424_v5 = vld [vmem:[%s369_s13] sm:$0xff]  ;;  %vm436_vm1 = vcmask 261120   ;;  %vm691_vm2 = vcmask 64512   ;;  %s2326_s17 = smov 120  }
  0x6a   : > { %1887 = vmatprep.subr.mxu1 %v2324_v0  ;;  %1895 = vmatprep.mubr.msk.f32.mxu1 %vm2325_vm0, %v2324_v0  ;;  %v599_v6 = vld [vmem:[#allocation7 + $0x18] sm:$0xff]  ;;  %v598_v7 = vld [vmem:[#allocation7 + $0x10] sm:$0xff]  ;;  %v597_v8 = vld [vmem:[#allocation7 + $0x8] sm:$0xff]  ;;  %v2612_v32 = vshrl.u32 %v682_v30, 7  ;;  %v2614_v33 = vand.u32 127, %v682_v30  ;;  %s2327_s24 = smov 112  }
  0x6b   : > { %1877 = vmatpush3.msra.mxu0 %v428_v1  ;;  %v596_v9 = vld [vmem:[#allocation7] sm:$0xff]  ;;  %v513_v10 = vld [vmem:[#allocation10 + $0x18] sm:$0xff]  ;;  %v512_v11 = vld [vmem:[#allocation10 + $0x10] sm:$0xff]  ;;  %s2328_s21 = smov 104   ;;  %s1834_s19 = sshll.u32 %s2307_s12, 7 }
  0x6c   : > { %1878 = vmatprep.subr.mxu0 %v2324_v0  ;;  %1888 = vmatpush3.msra.mxu1 %v513_v10  ;;  %v511_v12 = vld [vmem:[#allocation10 + $0x8] sm:$0xff]  ;;  %v510_v13 = vld [vmem:[#allocation10] sm:$0xff]  ;;  %vm688_vm3 = vcmp.ge.s32.totalorder %v2612_v32, %v2614_v33  ;;  %s419_s15 = scalar_lea.vmem [#allocation13], %s1804_s23  ;;  %s1672_s5 = scalar_lea.hbm %s2739_s9, %s1834_s19 }
  0x6d   : > { %1879 = vmatpush3.msra.mxu0 %v427_v2  ;;  %1889 = vmatprep.subr.mxu1 %v2324_v0  ;;  %v1810_v14 = vld [vmem:[%s2734_s4] ss:$0 sm:$0xff]  ;;  %v1021_v55 = vld [vmem:[#allocation12 + $0x8] sm:$0xff]  ;;  %s1674_s25 = sshll.u32 %s419_s15, 4  ;;  %s1660_s7 = scalar_lea.sflag [#allocation6], %s2532_s3  ;;  %s1675_s25 = int_to_ptr.vmem [resolvable:$true] %s1674_s25 }
  0x6e   : > { %1880 = vmatprep.subr.mxu0 %v2324_v0  ;;  %1890 = vmatpush3.msra.mxu1 %v512_v11  ;;  %v1814_v18 = vld [vmem:[%s2732_s2] ss:$0 sm:$0xff]  ;;  %s2227_s16 = scalar_lea.vmem %s1675_s25, 128  ;;  %s2329_s12 = smov [#allocation13]  }
  0x6f   : > { %1881 = vmatpush3.msra.mxu0 %v426_v3  ;;  %1891 = vmatprep.subr.mxu1 %v2324_v0  ;;  %v1812_v24 = vld [vmem:[%s2736_s6] ss:$0 sm:$0xff]  ;;  %p2228_p1 = scmp.ne.s32.totalorder %s1675_s25, %s2227_s16 }
  0x70   : > { %1882 = vmatprep.subr.mxu0 %v2324_v0  ;;  %1892 = vmatpush3.msra.mxu1 %v511_v12  ;;  %v853_v60 = vld [vmem:[#allocation12] sm:$0xff] }
  0x71   : > { %1883 = vmatpush3.msra.mxu0 %v425_v4  ;;  %1893 = vmatprep.subr.mxu1 %v2324_v0  ;;  %p2229_p3 = pnand %p2228_p1, %p2502_p2 }
  0x72   : > { %1885 = vmatmul.mubr.msk.f32.vlgmr.msra.gmra.mxu0 %vm436_vm1, %v424_v5  ;;  %1898 = vmatprep.subr.mxu0 %v2324_v0 }
  0x73   : > { %1899 = vmatpush3.msra.mxu0 %v599_v6  ;;  %1906 = vmatprep.mubr.msk.f32.mxu0 %vm2325_vm0, %v2324_v0  ;;  %p2230_p5 = pneg %p2229_p3 }
  0x74   : > { %1900 = vmatprep.subr.mxu0 %v2324_v0  ;;  %1894 = vmatpush3.msra.mxu1 %v510_v13 }
  0x75   : > { %1901 = vmatpush3.msra.mxu0 %v598_v7  ;;  %1896 = vmatmul.mubr.msk.f32.vlgmr.msra.gmra.mxu1 %vm436_vm1, %v424_v5 }
  0x76   : > { %1902 = vmatprep.subr.mxu0 %v2324_v0  ;;  %1909 = vmatprep.subr.mxu1 %v2324_v0 }
  0x77   : > { %1903 = vmatpush3.msra.mxu0 %v597_v8  ;;  %1911 = vmatprep.mubr.msk.f32.mxu1 %vm2325_vm0, %v2324_v0 }
  0x78   : > { %1904 = vmatprep.subr.mxu0 %v2324_v0 }
  0x79   : > { %1905 = vmatpush3.msra.mxu0 %v596_v9 }
  0x7a   : > { %1907 = vmatmul.mubr.msk.f32.vlgmr.msra.gmra.mxu0 %vm436_vm1, %v424_v5  ;;  %1919 = vmatprep.subr.mxu0 %v2324_v0 }
  0x7b   : > { %1921 = vmatprep.mubr.msk.f32.mxu0 %vm2325_vm0, %v2324_v0 }
 0x132   : > { %v506_v15 = vpop.f32.mrf.mxu0 }
 0x133   : > { %v507_v16 = vadd.f32 %v1810_v14, %v506_v15 }
 0x134   : > { %v1886_v17 = vpop.f32.mrf.mxu0 }
 0x135   : > { %591 = vst.msk [vmem:[#allocation2] sm:$0xff] %vm436_vm1, %v507_v16  ;;  %v587_v25 = vpop.f32.mrf.mxu1 }
 0x136   : > { %v588_v26 = vadd.f32 %v1812_v24, %v587_v25 }
 0x137   : > { %v1897_v27 = vpop.f32.mrf.mxu1 }
 0x138   : > { %592 = vst.msk [vmem:[#allocation3] sm:$0xff] %vm436_vm1, %v588_v26 }
 0x13a   : > { %v677_v19 = vpop.f32.mrf.mxu0 }
 0x13b   : > { %v678_v20 = vadd.f32 %v1814_v18, %v677_v19 }
 0x13c   : > { %v1908_v21 = vpop.f32.mrf.mxu0  ;;  %v2584_v22 = vld [vmem:[#allocation2] sm:$0xff] }
 0x13d   : > { %v2586_v23 = vmul.f32 0.35355338, %v678_v20  ;;  %856 = vrot.lane.b32.xlu0 %v2584_v22, %s2326_s17  ;;  %1910 = vmatpush3.xpose.msk.msra.mxu1 %vm691_vm2, %v2584_v22 }
 0x13e   : > { %1914 = vmatprep.subr.mxu1 %v2324_v0 }
 0x13f   : > { %v2608_v31 = vld [vmem:[#allocation3] sm:$0xff] }
 0x140   : > { %1912 = vmatmul.mubr.msk.f32.vlgmr.msra.gmra.mxu1 %vm691_vm2, %v2586_v23 }
 0x141   : > { %854 = vrot.lane.b32.xlu0 %v2586_v23, %s2326_s17  ;;  %1916 = vmatprep.mubr.msk.f32.mxu1 %vm2325_vm0, %v2324_v0 }
 0x142   : > { %1915 = vmatpush3.msra.mxu1 %v2608_v31 }
 0x143   : > { %1924 = vmatprep.subr.mxu1 %v2324_v0 }
 0x1af   : > { %v857_v28 = vpop.permute.xlu0 %856 }
 0x1b0   : > { %1920 = vmatpush3.xpose.msk.msra.mxu0 %vm691_vm2, %v857_v28 }
 0x1b1   : > { %1929 = vmatprep.subr.mxu0 %v2324_v0 }
 0x1b3   : > { %v855_v29 = vpop.permute.xlu0 %854 }
 0x1b4   : > { %1922 = vmatmul.mubr.msk.f32.vlgmr.msra.gmra.mxu0 %vm691_vm2, %v855_v29 }
 0x1b5   : > { %1931 = vmatprep.mubr.msk.f32.mxu0 %vm2325_vm0, %v2324_v0  ;;  %1930 = vmatpush3.msra.mxu0 %v1021_v55 }
 0x1b6   : > { %1939 = vmatprep.subr.mxu0 %v2324_v0 }
 0x200   : > { %v764_v34 = vpop.f32.mrf.mxu1 }
 0x201   : > { %v768_v35 = vsel %vm688_vm3, %v764_v34, -1e+10 }
 0x202   : > { %v1913_v36 = vpop.f32.mrf.mxu1  ;;  %v769_v37 = vsel %vm691_vm2, %v768_v35, -inf }
 0x203   : > { %770 = vmax.xlane.f32.xlu1 %v769_v37 }
 0x274   : > { %v928_v38 = vpop.f32.mrf.mxu0 }
 0x275   : > { %v932_v39 = vsel %vm688_vm3, %v928_v38, -1e+10 }
 0x276   : > { %v1923_v40 = vpop.f32.mrf.mxu0  ;;  %v933_v41 = vsel %vm691_vm2, %v932_v39, -inf }
 0x277   : > { %934 = vmax.xlane.f32.xlu1 %v933_v41 }
 0x28c   : > { %v771_v42 = vpop.xlane.xlu1 %770 }
 0x28d   : > { %v772_v43 = vsub.f32 %v768_v35, %v771_v42 }
 0x28f   : > { %v773_v44 = vmul.f32 1.442695, %v772_v43 }
 0x291   : > { %2079 = vpow2.f32 %v773_v44 }
 0x29e   : > { %v2080_v45 = vpop.eup %2079 }
 0x29f   : > { %v775_v46 = vsel %vm691_vm2, %v2080_v45, 0.0 }
 0x2a0   : > { %776 = vadd.xlane.f32.xlu0 %v775_v46  ;;  %v1832_v46 = vld [vmem:[%s2738_s8] ss:$0 sm:$0xff] }
 0x2b6   : > { %1258 = vrot.lane.b32.xlu0 %v2608_v31, %s2327_s24 }
 0x300   : > { %v935_v47 = vpop.xlane.xlu1 %934 }
 0x301   : > { %v936_v48 = vsub.f32 %v932_v39, %v935_v47 }
 0x303   : > { %v937_v49 = vmul.f32 1.442695, %v936_v48 }
 0x305   : > { %2081 = vpow2.f32 %v937_v49 }
 0x312   : > { %v2082_v50 = vpop.eup %2081 }
 0x313   : > { %v939_v51 = vsel %vm691_vm2, %v2082_v50, 0.0 }
 0x314   : > { %940 = vadd.xlane.f32.xlu1 %v939_v51 }
 0x325   : > { %945 = vrot.lane.b32.xlu1 %v2608_v31, %s2326_s17  ;;  %s2231_s17 = sshll.u32 %s2329_s12, 4  ;;  %s2232_s17 = int_to_ptr.vmem [resolvable:$false] %s2231_s17 }
 0x326   : > { %s2233_s23 = scalar_lea.vmem %s2232_s17, 256  ;;  %p2234_p0 = scmp.lt.s32.totalorder %s1675_s25, %s2232_s17 }
 0x327   : > { %p2235_p8 = scmp.lt.s32.totalorder %s2233_s23, %s2227_s16 }
 0x329   : > { %v777_v52 = vpop.xlane.xlu0 %776  ;;  %1170 = vrot.lane.b32.xlu1 %v2584_v22, %s2327_s24  ;;  %p2236_p7 = por %p2235_p8, %p2234_p0 }
 0x32a   : > { %2083 = vrcp.f32 %v777_v52 }
 0x32b   : > { %p2237_p9 = pnand %p2236_p7, %p2230_p5 }
 0x32d   : > { %1168 = vrot.lane.b32.xlu1 %v2586_v23, %s2327_s24  ;;  %v1259_v62 = vpop.permute.xlu0 %1258 }
 0x337   : > { %v2084_v53 = vpop.eup %2083 }
 0x338   : > { %v779_v54 = vmul.f32 %v2084_v53, %v2080_v45 }
 0x33a   : > { %1917 = vmatmul.mubr.msk.f32.vlgmr.msra.gmra.mxu1 %vm691_vm2, %v779_v54 }
 0x33b   : > { %1926 = vmatprep.mubr.msk.f32.mxu1 %vm2325_vm0, %v2324_v0 }
 0x39d   : > { %v941_v56 = vpop.xlane.xlu1 %940 }
 0x39e   : > { %2085 = vrcp.f32 %v941_v56 }
 0x3a1   : > { %v946_v57 = vpop.permute.xlu1 %945 }
 0x3a2   : > { %1925 = vmatpush3.msra.mxu1 %v946_v57 }
 0x3a3   : > { %1934 = vmatprep.subr.mxu1 %v2324_v0 }
 0x3a5   : > { %v1171_v1 = vpop.permute.xlu1 %1170 }
 0x3a9   : > { %v1169_v4 = vpop.permute.xlu1 %1168 }
 0x3ab   : > { %v2086_v58 = vpop.eup %2085 }
 0x3ac   : > { %v943_v59 = vmul.f32 %v2086_v58, %v2082_v50 }
 0x3ae   : > { %1927 = vmatmul.mubr.msk.f32.vlgmr.msra.gmra.mxu1 %vm691_vm2, %v943_v59 }
 0x3af   : > { %1935 = vmatpush3.msra.mxu1 %v853_v60  ;;  %1936 = vmatprep.mubr.msk.f32.mxu1 %vm2325_vm0, %v2324_v0 }
 0x3b0   : > { %1944 = vmatprep.subr.mxu1 %v2324_v0 }
 0x3fa   : > { %v849_v61 = vpop.f32.mrf.mxu1 }
 0x3fb   : > { %1937 = vmatmul.mubr.msk.f32.vlgmr.msra.gmra.mxu1 %vm691_vm2, %v849_v61 }
 0x3fc   : > { %1945 = vmatpush3.msra.mxu1 %v1259_v62  ;;  %v1918_v63 = vpop.f32.mrf.mxu1  ;;  %1946 = vmatprep.mubr.msk.f32.mxu1 %vm2325_vm0, %v2324_v0 }
 0x3fd   : > { %1954 = vmatprep.subr.mxu1 %v2324_v0 }
 0x46e   : > { %v1017_v2 = vpop.f32.mrf.mxu1 }
 0x46f   : > { %1932 = vmatmul.mubr.msk.f32.vlgmr.msra.gmra.mxu0 %vm691_vm2, %v1017_v2 }
 0x470   : > { %1940 = vmatpush3.xpose.msk.msra.mxu0 %vm691_vm2, %v1171_v1  ;;  %v1928_v3 = vpop.f32.mrf.mxu1  ;;  %1941 = vmatprep.mubr.msk.f32.mxu0 %vm2325_vm0, %v2324_v0 }
 0x471   : > { %1949 = vmatprep.subr.mxu0 %v2324_v0 }
 0x473   : > { %1942 = vmatmul.mubr.msk.f32.vlgmr.msra.gmra.mxu0 %vm691_vm2, %v1169_v4 }
 0x474   : > { %1951 = vmatprep.mubr.msk.f32.mxu0 %vm2325_vm0, %v2324_v0 }
 0x4bb   : > { %v1164_v5 = vpop.f32.mrf.mxu1 }
 0x4bd   : > { %v1938_v6 = vpop.f32.mrf.mxu1 }
 0x52f   : > { %v1091_v7 = vpop.f32.mrf.mxu0 }
 0x530   : > { %v1165_v38 = vadd.f32 %v1164_v5, %v1091_v7 }
 0x531   : > { %v1933_v8 = vpop.f32.mrf.mxu0 }
 0x533   : > { %v1242_v9 = vpop.f32.mrf.mxu0 }
 0x534   : > { %v1246_v10 = vsel %vm688_vm3, %v1242_v9, -1e+10 }
 0x535   : > { %v1943_v11 = vpop.f32.mrf.mxu0  ;;  %v1247_v12 = vsel %vm691_vm2, %v1246_v10, -inf }
 0x536   : > { %1248 = vmax.xlane.f32.xlu1 %v1247_v12 }
 0x5bf   : > { %v1249_v13 = vpop.xlane.xlu1 %1248 }
 0x5c0   : > { %v1250_v14 = vsub.f32 %v1246_v10, %v1249_v13 }
 0x5c2   : > { %v1251_v15 = vmul.f32 1.442695, %v1250_v14 }
 0x5c4   : > { %2087 = vpow2.f32 %v1251_v15 }
 0x5d1   : > { %v2088_v16 = vpop.eup %2087 }
 0x5d2   : > { %v1253_v17 = vsel %vm691_vm2, %v2088_v16, 0.0 }
 0x5d3   : > { %1254 = vadd.xlane.f32.xlu0 %v1253_v17 }
 0x5e9   : > { %1411 = vrot.lane.b32.xlu0 %v2584_v22, %s2328_s21  ;;  %v1334_v22 = vld [vmem:[#allocation12 + $0x10] sm:$0xff] }
 0x5ea   : > { %1950 = vmatpush3.msra.mxu0 %v1334_v22 }
 0x5eb   : > { %1959 = vmatprep.subr.mxu0 %v2324_v0 }
 0x5ed   : > { %1409 = vrot.lane.b32.xlu0 %v2586_v23, %s2328_s21 }
 0x65c   : > { %v1255_v18 = vpop.xlane.xlu0 %1254 }
 0x65d   : > { %2089 = vrcp.f32 %v1255_v18 }
 0x660   : > { %v1412_v20 = vpop.permute.xlu0 %1411 }
 0x664   : > { %v1410_v24 = vpop.permute.xlu0 %1409 }
 0x66a   : > { %v2090_v19 = vpop.eup %2089 }
 0x66b   : > { %v1257_v21 = vmul.f32 %v2090_v19, %v2088_v16 }
 0x66d   : > { %1947 = vmatmul.mubr.msk.f32.vlgmr.msra.gmra.mxu1 %vm691_vm2, %v1257_v21 }
 0x66e   : > { %1955 = vmatpush3.xpose.msk.msra.mxu1 %vm691_vm2, %v1412_v20  ;;  %1956 = vmatprep.mubr.msk.f32.mxu1 %vm2325_vm0, %v2324_v0 }
 0x66f   : > { %1964 = vmatprep.subr.mxu1 %v2324_v0 }
 0x671   : > { %1957 = vmatmul.mubr.msk.f32.vlgmr.msra.gmra.mxu1 %vm691_vm2, %v1410_v24 }
 0x672   : > { %1966 = vmatprep.mubr.msk.f32.mxu1 %vm2325_vm0, %v2324_v0 }
 0x72d   : > { %v1330_v23 = vpop.f32.mrf.mxu1 }
 0x72e   : > { %1952 = vmatmul.mubr.msk.f32.vlgmr.msra.gmra.mxu0 %vm691_vm2, %v1330_v23 }
 0x72f   : > { %v1948_v25 = vpop.f32.mrf.mxu1  ;;  %1961 = vmatprep.mubr.msk.f32.mxu0 %vm2325_vm0, %v2324_v0  ;;  %v1575_v0 = vld [vmem:[#allocation12 + $0x18] sm:$0xff] }
 0x730   : > { %1965 = vmatpush3.msra.mxu1 %v1575_v0 }
 0x731   : > { %v1483_v26 = vpop.f32.mrf.mxu1 }
 0x732   : > { %v1487_v27 = vsel %vm688_vm3, %v1483_v26, -1e+10 }
 0x733   : > { %v1958_v28 = vpop.f32.mrf.mxu1  ;;  %v1488_v29 = vsel %vm691_vm2, %v1487_v27, -inf }
 0x734   : > { %1489 = vmax.xlane.f32.xlu0 %v1488_v29 }
 0x7bd   : > { %v1490_v30 = vpop.xlane.xlu0 %1489 }
 0x7be   : > { %v1491_v34 = vsub.f32 %v1487_v27, %v1490_v30 }
 0x7c0   : > { %v1492_v35 = vmul.f32 1.442695, %v1491_v34 }
 0x7c2   : > { %2091 = vpow2.f32 %v1492_v35 }
 0x7cf   : > { %v2092_v36 = vpop.eup %2091 }
 0x7d0   : > { %v1494_v37 = vsel %vm691_vm2, %v2092_v36, 0.0 }
 0x7d1   : > { %1495 = vadd.xlane.f32.xlu1 %v1494_v37 }
 0x7e2   : > { %1499 = vrot.lane.b32.xlu1 %v2608_v31, %s2328_s21 }
 0x7ee   : > { %v1404_v32 = vpop.f32.mrf.mxu0 }
 0x7ef   : > { %v1408_v33 = vadd.f32 %v1404_v32, %v1165_v38 }
 0x7f0   : > { %v1953_v39 = vpop.f32.mrf.mxu0 }
 0x85a   : > { %v1496_v40 = vpop.xlane.xlu1 %1495 }
 0x85b   : > { %2093 = vrcp.f32 %v1496_v40 }
 0x85e   : > { %v1500_v41 = vpop.permute.xlu1 %1499 }
 0x85f   : > { %1960 = vmatpush3.msra.mxu0 %v1500_v41 }
 0x868   : > { %v2094_v42 = vpop.eup %2093 }
 0x869   : > { %v1498_v43 = vmul.f32 %v2094_v42, %v2092_v36 }
 0x86b   : > { %1962 = vmatmul.mubr.msk.f32.vlgmr.msra.gmra.mxu0 %vm691_vm2, %v1498_v43 }
 0x92b   : > { %v1571_v44 = vpop.f32.mrf.mxu0 }
 0x92c   : > { %1967 = vmatmul.mubr.msk.f32.vlgmr.msra.gmra.mxu1 %vm691_vm2, %v1571_v44 }
 0x92d   : > { %v1963_v31 = vpop.f32.mrf.mxu0 }
 0x9ec   : > { %v1645_v45 = vpop.f32.mrf.mxu1 }
 0x9ed   : > { %v1649_v47 = vadd.f32 %v1645_v45, %v1408_v33 }
 0x9ee   : > { %v1968_v48 = vpop.f32.mrf.mxu1 }
 0x9ef   : > { %v1657_v49 = vadd.f32 %v1832_v46, %v1649_v47 }
 0x9f1   : > { %1658 = vst.msk [vmem:[%s419_s15] sm:$0xff] %vm436_vm1, %v1657_v49 }
 0x9f2   : > { %2240 = shalt.err (!%p2237_p9)
}
 0x9f3   : > { %s2241_s27 = scalar_lea.hbm %s1672_s5, 128  ;;  %s2245_s24 = scalar_lea.hbm %s2739_s9, 256 }
 0x9f4   : > { %p2242_p10 = scmp.ne.s32.totalorder %s1672_s5, %s2241_s27  ;;  %p2246_p13 = scmp.lt.s32.totalorder %s1672_s5, %s2739_s9 }
 0x9f5   : > { %p2247_p4 = scmp.lt.s32.totalorder %s2245_s24, %s2241_s27 }
 0x9f6   : > { %p2243_p12 = pnand %p2242_p10, %p2502_p2 }
 0x9f7   : > { %p2248_p11 = por %p2247_p4, %p2246_p13 }
 0x9f8   : > { %p2244_p6 = pneg %p2243_p12 }
 0x9fa   : > { %p2249_p1 = pnand %p2248_p11, %p2244_p6 }
 0x9fc   : > { %2252 = shalt.err (!%p2249_p1)
}
 0x9fd   : > { %1987 = dma.vmem_to_hbm [thread:$0]  (%p2502_p2), %s1675_s25, 128, %s1672_s5, %s1660_s7  }
 0x9fe PF: > { %s1686_s20 = sand.u32 1, %s2295_s30   ;;  %p2760_p3 = scmp.ne.s32.totalorder %s2758_s29, 0 }
 0x9ff   : > { %p2761_p5 = scmp.ge.s32.totalorder %s2315_s14, 2  ;;  %s1687_s19 = scalar_lea.sflag [#allocation6], %s1686_s20 }
 0xa01   : > { %p2007_p0 = pnand %p2761_p5, %p2760_p3 }
 0xa03   : > { %p2008_p8 = pneg %p2007_p0 }
 0xa05   : > { %2290 = dma.done.wait (%p2008_p8), %s1687_s19, 128  }
 0xa06   : > { %2292 = vsyncadd (%p2008_p8), %s1687_s19, 4294967168  ;;  %s27_s14 = sadd.s32 1, %s2315_s14   ;;  %s2762_s12 = sld [smem:[#allocation18_spill]] }
 0xa07   : > { %p24_p7 = scmp.ge.s32.totalorder %s27_s14, 4   ;;  %s2763_s13 = sld [smem:[#allocation19_spill]] }
 0xa08   : > { %s2764_s30 = smov %s2299_s10  ;;  %s2765_s10 = smov %s2303_s11 }
 0xa09   : > { %s2766_s11 = smov %s2507_s22  ;;  %26 = sbr.rel (!%p24_p7) target bundleno = 13 (0xd), region = 122 }
 0xa0e   :  { %1692 = vsyncpa [#allocation5], 1 }
 0xa0f   :  { %1694 = vsyncpa [#allocation5 + $0x1], 1 }
 0xa10   :  { %1695 = vsyncpa [#allocation8], 1 }
 0xa11   :  { %1696 = vsyncpa [#allocation11], 1 }
 0xa12   :  { %1697 = vsyncpa [#allocation6], 1 }
 0xa13   :  { %1699 = vsyncpa [#allocation6 + $0x1], 1 }

</bundles_post_ra>
